<compile_context>
chip_gen: v5e
topology: v5e:2x2
jax: 0.10.0
libtpu: 0.0.40
codegen_flags: <defaults>
</compile_context>

<pallas_src>
import jax
import jax.numpy as jnp
from jax.experimental import pallas as pl
from jax.experimental.pallas import tpu as pltpu

BN_EPS = 1e-5
LANE = 128


def _round_up(x, m):
    return (x + m - 1) // m * m


# ---------------------------------------------------------------------------
# Kernel: three MXU matmuls + bias + ReLU (BN pre-folded, Dropout = identity).
# ---------------------------------------------------------------------------
def cls_head_kernel(feat_ref, w1_ref, b1_ref, w2_ref, b2_ref, w3_ref, b3_ref,
                    out_ref):
    x = feat_ref[...].astype(jnp.bfloat16)                      # [TB, C]

    h = jnp.dot(x, w1_ref[...], preferred_element_type=jnp.float32) + b1_ref[...]
    h = jnp.maximum(h, 0.0)

    h = jnp.dot(h.astype(jnp.bfloat16), w2_ref[...],
                preferred_element_type=jnp.float32) + b2_ref[...]
    h = jnp.maximum(h, 0.0)

    out_ref[...] = (
        jnp.dot(h.astype(jnp.bfloat16), w3_ref[...],
                preferred_element_type=jnp.float32) + b3_ref[...]
    )


# ---------------------------------------------------------------------------
# Host-side parameter preparation.
# ---------------------------------------------------------------------------
def fold_bn_into_linear(w, b, g, be, m, v, eps=BN_EPS):
    """Fold eval-mode BatchNorm1d into the preceding Linear (y = x @ w + b)."""
    scale = g * jax.lax.rsqrt(v + eps)          # [1, C_out]
    return w * scale, (b - m) * scale + be


def pack_params(params):
    """Fold BN, cast weights to bf16, pad num_classes up to a lane-dense 128."""
    num_classes = params["w3"].shape[1]
    nc_pad = _round_up(max(num_classes, LANE), LANE)

    w1, b1 = fold_bn_into_linear(params["w1"], params["b1"], params["g1"],
                                 params["be1"], params["m1"], params["v1"])
    w2, b2 = fold_bn_into_linear(params["w2"], params["b2"], params["g2"],
                                 params["be2"], params["m2"], params["v2"])
    w3 = jnp.zeros((params["w3"].shape[0], nc_pad), jnp.float32)
    w3 = w3.at[:, :num_classes].set(params["w3"])
    b3 = jnp.zeros((1, nc_pad), jnp.float32).at[:, :num_classes].set(params["b3"])

    return dict(
        w1=w1.astype(jnp.bfloat16), b1=b1.astype(jnp.float32),
        w2=w2.astype(jnp.bfloat16), b2=b2.astype(jnp.float32),
        w3=w3.astype(jnp.bfloat16), b3=b3.astype(jnp.float32),
        num_classes=num_classes,
    )


# ---------------------------------------------------------------------------
# Wrapper.
# ---------------------------------------------------------------------------
def cls_head_forward(feat, packed, *, max_tile_b=256):
    """feat: [B, backbone_embed_dim] f32. packed: output of pack_params()."""
    B, C = feat.shape
    num_classes = packed["num_classes"]
    w1, b1 = packed["w1"], packed["b1"]
    w2, b2 = packed["w2"], packed["b2"]
    w3, b3 = packed["w3"], packed["b3"]
    h1, h2 = w1.shape[1], w2.shape[1]
    nc_pad = w3.shape[1]

    # Batch tiling: multiple-of-8 rows (f32 sublane), capped for VMEM headroom.
    tile_b = min(max_tile_b, _round_up(B, 8))
    b_pad = _round_up(B, tile_b)
    if b_pad != B:
        feat = jnp.pad(feat, ((0, b_pad - B), (0, 0)))
    grid = (b_pad // tile_b,)

    def resident(shape):
        # Constant block index across the grid -> weights stay VMEM-resident,
        # no re-DMA per batch tile.
        return pl.BlockSpec(shape, lambda i: (0, 0))

    flops = 2 * b_pad * (C * h1 + h1 * h2 + h2 * nc_pad)
    bytes_accessed = (feat.nbytes + w1.nbytes + w2.nbytes + w3.nbytes
                      + b1.nbytes + b2.nbytes + b3.nbytes
                      + b_pad * nc_pad * 4)

    # Explicit VMEM budget: resident params + double-buffered feat/out tiles.
    vmem_need = (w1.nbytes + w2.nbytes + w3.nbytes
                 + b1.nbytes + b2.nbytes + b3.nbytes
                 + 2 * tile_b * C * 4 + 2 * tile_b * nc_pad * 4)
    vmem_limit = int(min(32 * 1024 * 1024, max(4 * 1024 * 1024, 2 * vmem_need)))

    out = pl.pallas_call(
        cls_head_kernel,
        out_shape=jax.ShapeDtypeStruct((b_pad, nc_pad), jnp.float32),
        grid=grid,
        in_specs=[
            pl.BlockSpec((tile_b, C), lambda i: (i, 0)),   # feat streamed per tile
            resident((C, h1)), resident((1, h1)),
            resident((h1, h2)), resident((1, h2)),
            resident((h2, nc_pad)), resident((1, nc_pad)),
        ],
        out_specs=pl.BlockSpec((tile_b, nc_pad), lambda i: (i, 0)),
        compiler_params=pltpu.CompilerParams(
            dimension_semantics=("parallel",),
            vmem_limit_bytes=vmem_limit,
        ),
        cost_estimate=pl.CostEstimate(
            flops=flops, transcendentals=0, bytes_accessed=bytes_accessed),
    )(feat, w1, b1, w2, b2, w3, b3)

    return out[:B, :num_classes]


# ---------------------------------------------------------------------------
# Synthetic parameters (PyTorch nn.Linear weight is [out, in]; we store the
# transpose [in, out] so the kernel computes x @ W + b directly).
# ---------------------------------------------------------------------------
def make_params(key, embed_dim=256, num_classes=40):
    ks = jax.random.split(key, 12)

    def lin(kw, kb, cin, cout):
        w = jax.random.normal(kw, (cin, cout), jnp.float32) * (1.0 / jnp.sqrt(cin))
        b = jax.random.normal(kb, (1, cout), jnp.float32) * 0.01
        return w, b

    def bn(kg, kb, km, kv, c):
        g = 1.0 + 0.1 * jax.random.normal(kg, (1, c), jnp.float32)
        be = 0.1 * jax.random.normal(kb, (1, c), jnp.float32)
        m = 0.1 * jax.random.normal(km, (1, c), jnp.float32)
        v = jnp.abs(jax.random.normal(kv, (1, c), jnp.float32)) + 0.5
        return g, be, m, v

    w1, b1 = lin(ks[0], ks[1], embed_dim, 256)
    g1, be1, m1, v1 = bn(ks[2], ks[3], ks[4], ks[5], 256)
    w2, b2 = lin(ks[6], ks[7], 256, 128)
    g2, be2, m2, v2 = bn(ks[8], ks[9], ks[10], ks[11], 128)
    kw3, kb3 = jax.random.split(jax.random.fold_in(key, 99))
    w3, b3 = lin(kw3, kb3, 128, num_classes)

    return dict(
        w1=w1, b1=b1, g1=g1, be1=be1, m1=m1, v1=v1,
        w2=w2, b2=b2, g2=g2, be2=be2, m2=m2, v2=v2,
        w3=w3, b3=b3,
    )


def cls_head_reference(feat, p):
    """Pure-JAX f32 reference mirroring PyTorch eval-mode semantics (unfused)."""
    h = feat @ p["w1"] + p["b1"]
    h = (h - p["m1"]) / jnp.sqrt(p["v1"] + BN_EPS) * p["g1"] + p["be1"]
    h = jnp.maximum(h, 0.0)
    h = h @ p["w2"] + p["b2"]
    h = (h - p["m2"]) / jnp.sqrt(p["v2"] + BN_EPS) * p["g2"] + p["be2"]
    h = jnp.maximum(h, 0.0)
    return h @ p["w3"] + p["b3"]


if __name__ == "__main__":
    key = jax.random.PRNGKey(0)
    k_feat, k_params = jax.random.split(key)

    B = 8                      # batch of point-cloud scenes
    EMBED_DIM = 256            # backbone_embed_dim
    NUM_CLASSES = 40           # ModelNet40 default

    feat = jax.random.normal(k_feat, (B, EMBED_DIM), jnp.float32)
    params = make_params(k_params, EMBED_DIM, NUM_CLASSES)
    packed = pack_params(params)   # one-time host-side fold/cast/pad

    cls_logits = cls_head_forward(feat, packed)
    jax.block_until_ready(cls_logits)

    ref = cls_head_reference(feat, params)
    assert cls_logits.shape == (B, NUM_CLASSES)
    max_err = float(jnp.max(jnp.abs(cls_logits - ref)))
    # bf16 weights/activations on the MXU vs f32 reference -> loosened tolerance.
    assert jnp.allclose(cls_logits, ref, atol=5e-2, rtol=5e-2), f"max_err={max_err}"

    print("KERNEL_OK")
</pallas_src>

<mosaic_0001>
module attributes {stable_mosaic.version = 11 : i64} {
  func.func @cls_head_kernel(%arg0: i32, %arg1: memref<8x256xf32, #tpu.memory_space<vmem>>, %arg2: memref<256x256xbf16, #tpu.memory_space<vmem>>, %arg3: memref<1x256xf32, #tpu.memory_space<vmem>>, %arg4: memref<256x128xbf16, #tpu.memory_space<vmem>>, %arg5: memref<1x128xf32, #tpu.memory_space<vmem>>, %arg6: memref<128x128xbf16, #tpu.memory_space<vmem>>, %arg7: memref<1x128xf32, #tpu.memory_space<vmem>>, %arg8: memref<8x128xf32, #tpu.memory_space<vmem>>) attributes {dimension_semantics = [#tpu.dimension_semantics<parallel>], iteration_bounds = array<i64: 1>, scalar_prefetch = 0 : i64, scratch_operands = 0 : i64, tpu.core_type = #tpu.core_type<tc>, window_params = [{transform_indices = @transform_0, window_bounds = array<i64: 8, 256>}, {pipeline_mode = #tpu.pipeline_mode<synchronous>, transform_indices = @transform_1, window_bounds = array<i64: 256, 256>}, {pipeline_mode = #tpu.pipeline_mode<synchronous>, transform_indices = @transform_2, window_bounds = array<i64: 1, 256>}, {pipeline_mode = #tpu.pipeline_mode<synchronous>, transform_indices = @transform_3, window_bounds = array<i64: 256, 128>}, {pipeline_mode = #tpu.pipeline_mode<synchronous>, transform_indices = @transform_4, window_bounds = array<i64: 1, 128>}, {pipeline_mode = #tpu.pipeline_mode<synchronous>, transform_indices = @transform_5, window_bounds = array<i64: 128, 128>}, {pipeline_mode = #tpu.pipeline_mode<synchronous>, transform_indices = @transform_6, window_bounds = array<i64: 1, 128>}, {transform_indices = @transform_7, window_bounds = array<i64: 8, 128>}]} {
    %c0 = arith.constant 0 : index
    %c0_0 = arith.constant 0 : index
    %0 = vector.load %arg1[%c0, %c0_0] : memref<8x256xf32, #tpu.memory_space<vmem>>, vector<8x256xf32>
    %1 = arith.truncf %0 : vector<8x256xf32> to vector<8x256xbf16>
    %c0_1 = arith.constant 0 : index
    %c0_2 = arith.constant 0 : index
    %2 = vector.load %arg2[%c0_1, %c0_2] : memref<256x256xbf16, #tpu.memory_space<vmem>>, vector<256x256xbf16>
    %cst = arith.constant dense<0.000000e+00> : vector<8x256xf32>
    %3 = tpu.matmul %1, %2, %cst {dimension_numbers = #tpu.dot_dimension_numbers<[1], [0], [0], [1], [0, 0, 1, 1], [], []>} : vector<8x256xbf16>, vector<256x256xbf16>, vector<8x256xf32> -> vector<8x256xf32>
    %c0_3 = arith.constant 0 : index
    %c0_4 = arith.constant 0 : index
    %4 = vector.load %arg3[%c0_3, %c0_4] : memref<1x256xf32, #tpu.memory_space<vmem>>, vector<1x256xf32>
    %5 = vector.broadcast %4 : vector<1x256xf32> to vector<8x256xf32>
    %6 = arith.addf %3, %5 : vector<8x256xf32>
    %cst_5 = arith.constant 0.000000e+00 : f32
    %7 = vector.broadcast %cst_5 : f32 to vector<8x256xf32>
    %8 = arith.maximumf %6, %7 : vector<8x256xf32>
    %9 = arith.truncf %8 : vector<8x256xf32> to vector<8x256xbf16>
    %c0_6 = arith.constant 0 : index
    %c0_7 = arith.constant 0 : index
    %10 = vector.load %arg4[%c0_6, %c0_7] : memref<256x128xbf16, #tpu.memory_space<vmem>>, vector<256x128xbf16>
    %cst_8 = arith.constant dense<0.000000e+00> : vector<8x128xf32>
    %11 = tpu.matmul %9, %10, %cst_8 {dimension_numbers = #tpu.dot_dimension_numbers<[1], [0], [0], [1], [0, 0, 1, 1], [], []>} : vector<8x256xbf16>, vector<256x128xbf16>, vector<8x128xf32> -> vector<8x128xf32>
    %c0_9 = arith.constant 0 : index
    %c0_10 = arith.constant 0 : index
    %12 = vector.load %arg5[%c0_9, %c0_10] : memref<1x128xf32, #tpu.memory_space<vmem>>, vector<1x128xf32>
    %13 = vector.broadcast %12 : vector<1x128xf32> to vector<8x128xf32>
    %14 = arith.addf %11, %13 : vector<8x128xf32>
    %cst_11 = arith.constant 0.000000e+00 : f32
    %15 = vector.broadcast %cst_11 : f32 to vector<8x128xf32>
    %16 = arith.maximumf %14, %15 : vector<8x128xf32>
    %17 = arith.truncf %16 : vector<8x128xf32> to vector<8x128xbf16>
    %c0_12 = arith.constant 0 : index
    %c0_13 = arith.constant 0 : index
    %18 = vector.load %arg6[%c0_12, %c0_13] : memref<128x128xbf16, #tpu.memory_space<vmem>>, vector<128x128xbf16>
    %cst_14 = arith.constant dense<0.000000e+00> : vector<8x128xf32>
    %19 = tpu.matmul %17, %18, %cst_14 {dimension_numbers = #tpu.dot_dimension_numbers<[1], [0], [0], [1], [0, 0, 1, 1], [], []>} : vector<8x128xbf16>, vector<128x128xbf16>, vector<8x128xf32> -> vector<8x128xf32>
    %c0_15 = arith.constant 0 : index
    %c0_16 = arith.constant 0 : index
    %20 = vector.load %arg7[%c0_15, %c0_16] : memref<1x128xf32, #tpu.memory_space<vmem>>, vector<1x128xf32>
    %21 = vector.broadcast %20 : vector<1x128xf32> to vector<8x128xf32>
    %22 = arith.addf %19, %21 : vector<8x128xf32>
    %c0_17 = arith.constant 0 : index
    %c0_18 = arith.constant 0 : index
    %23 = vector.load %arg8[%c0_17, %c0_18] : memref<8x128xf32, #tpu.memory_space<vmem>>, vector<8x128xf32>
    tpu.vector_store %arg8[%c0_17, %c0_18], %22 {strides = array<i32>} : memref<8x128xf32, #tpu.memory_space<vmem>>, vector<8x128xf32>,
    return
  }
  func.func @transform_0(%arg0: i32) -> (i32, i32) {
    %c0_i32 = arith.constant 0 : i32
    %c0_i32_0 = arith.constant 0 : i32
    return %arg0, %c0_i32 : i32, i32
  }
  func.func @transform_1(%arg0: i32) -> (i32, i32) {
    %c0_i32 = arith.constant 0 : i32
    %c0_i32_0 = arith.constant 0 : i32
    %c0_i32_1 = arith.constant 0 : i32
    return %c0_i32, %c0_i32_0 : i32, i32
  }
  func.func @transform_2(%arg0: i32) -> (i32, i32) {
    %c0_i32 = arith.constant 0 : i32
    %c0_i32_0 = arith.constant 0 : i32
    %c0_i32_1 = arith.constant 0 : i32
    return %c0_i32, %c0_i32_0 : i32, i32
  }
  func.func @transform_3(%arg0: i32) -> (i32, i32) {
    %c0_i32 = arith.constant 0 : i32
    %c0_i32_0 = arith.constant 0 : i32
    %c0_i32_1 = arith.constant 0 : i32
    return %c0_i32, %c0_i32_0 : i32, i32
  }
  func.func @transform_4(%arg0: i32) -> (i32, i32) {
    %c0_i32 = arith.constant 0 : i32
    %c0_i32_0 = arith.constant 0 : i32
    %c0_i32_1 = arith.constant 0 : i32
    return %c0_i32, %c0_i32_0 : i32, i32
  }
  func.func @transform_5(%arg0: i32) -> (i32, i32) {
    %c0_i32 = arith.constant 0 : i32
    %c0_i32_0 = arith.constant 0 : i32
    %c0_i32_1 = arith.constant 0 : i32
    return %c0_i32, %c0_i32_0 : i32, i32
  }
  func.func @transform_6(%arg0: i32) -> (i32, i32) {
    %c0_i32 = arith.constant 0 : i32
    %c0_i32_0 = arith.constant 0 : i32
    %c0_i32_1 = arith.constant 0 : i32
    return %c0_i32, %c0_i32_0 : i32, i32
  }
  func.func @transform_7(%arg0: i32) -> (i32, i32) {
    %c0_i32 = arith.constant 0 : i32
    %c0_i32_0 = arith.constant 0 : i32
    return %arg0, %c0_i32 : i32, i32
  }
}

</mosaic_0001>

<bundles_post_ra>
// kernel: tpu_custom_call.1
= control target key start
LH: loop header
LB: loop body
LE: loop exit
PB: predicated region body
PF: predicated region fallthrough
CT: control target
= control target key end

     0   :  { %12 = vsyncpa [#allocation3], 0  ;;  %s1138_s0 = inlined_call_operand.hbm [shape: f32[8,256], index: 0, kind: input, shape index: {}]   ;;  %s1139_s1 = inlined_call_operand.hbm [shape: bf16[256,256], index: 1, kind: input, shape index: {}]   ;;  %s1140_s2 = inlined_call_operand.hbm [shape: f32[1,256], index: 2, kind: input, shape index: {}]   ;;  %s1141_s3 = inlined_call_operand.hbm [shape: bf16[256,128], index: 3, kind: input, shape index: {}]   ;;  %s1142_s4 = inlined_call_operand.vmem [shape: f32[1,128], index: 4, kind: input, shape index: {}]   ;;  %s1143_s5 = inlined_call_operand.hbm [shape: bf16[128,128], index: 5, kind: input, shape index: {}]   ;;  %s1144_s6 = inlined_call_operand.vmem [shape: f32[1,128], index: 6, kind: input, shape index: {}]   ;;  %s1145_s7 = inlined_call_operand.hbm [shape: f32[8,128], index: 7, kind: output, shape index: {}]  }
   0x1   :  { %13 = vsyncpa [#allocation6], 0 }
   0x2   :  { %14 = vsyncpa [#allocation9], 0  ;;  %s31_s26 = sshll.u32 %s1139_s1, 4  ;;  %s32_s26 = int_to_ptr.hbm [resolvable:$true] %s31_s26 }
   0x3   :  { %15 = vsyncpa [#allocation4], 0  ;;  %s1064_s27 = smov [#allocation5]   ;;  %s55_s8 = sshll.u32 %s1141_s3, 4  ;;  %s56_s8 = int_to_ptr.hbm [resolvable:$true] %s55_s8 }
   0x4   :  { %s33_s28 = sshll.u32 %s1064_s27, 4  ;;  %s1065_s9 = smov 128   ;;  %s34_s28 = int_to_ptr.vmem [resolvable:$true] %s33_s28 }
   0x5   :  { %s1066_s10 = smov 8   ;;  %s1067_s11 = smov [#allocation8]  }
   0x6   :  { %39 = dma.hbm_to_vmem [thread:$0]  %s32_s26, 4096, %s34_s28, [#allocation6], %s1065_s9, %s1065_s9, %s1066_s10  }
   0x7   :  { %s57_s12 = sshll.u32 %s1067_s11, 4  ;;  %s1068_s13 = smov 64   ;;  %s58_s12 = int_to_ptr.vmem [resolvable:$true] %s57_s12 }
   0x8   :  { %s1069_s14 = smov 4   ;;  %s21_s16 = sshll.u32 %s1138_s0, 4  ;;  %s22_s16 = int_to_ptr.hbm [resolvable:$true] %s21_s16 }
   0x9   :  { %63 = dma.hbm_to_vmem [thread:$0]  %s56_s8, 2048, %s58_s12, [#allocation9], %s1068_s13, %s1068_s13, %s1069_s14  }
   0xa   :  { %s1070_s17 = smov [#allocation2]   ;;  %s45_s20 = sshll.u32 %s1140_s2, 4  ;;  %s46_s20 = int_to_ptr.hbm [resolvable:$true] %s45_s20 }
   0xb   :  { %s23_s18 = sshll.u32 %s1070_s17, 4  ;;  %s1071_s21 = smov [#allocation7]   ;;  %s24_s18 = int_to_ptr.vmem [resolvable:$true] %s23_s18 }
   0xc   :  { %26 = dma.hbm_to_vmem [thread:$0]  %s22_s16, 256, %s24_s18, [#allocation3]  }
   0xd   :  { %s47_s22 = sshll.u32 %s1071_s21, 4  ;;  %s70_s25 = sshll.u32 %s1143_s5, 4  ;;  %s48_s22 = int_to_ptr.vmem [resolvable:$true] %s47_s22  ;;  %s71_s25 = int_to_ptr.hbm [resolvable:$true] %s70_s25 }
   0xe   :  { %50 = dma.hbm_to_vmem [thread:$0]  %s46_s20, 32, %s48_s22, [#allocation6]  }
   0xf   :  { %s1072_s0 = smov [#allocation10]  }
  0x10   :  { %s72_s26 = sshll.u32 %s1072_s0, 4  ;;  %s73_s26 = int_to_ptr.vmem [resolvable:$true] %s72_s26 }
  0x11   :  { %78 = dma.hbm_to_vmem [thread:$0]  %s71_s25, 1024, %s73_s26, [#allocation9], %s1068_s13, %s1068_s13, %s1069_s14  }
  0x12   :  { %1056 = dma.done.wait [#allocation3], 256  }
  0x13   :  { %1057 = vsyncadd [#allocation3], 4294967040 }
  0x14   :  { %1058 = dma.done.wait [#allocation6], 4128  }
  0x15   :  { %1059 = vsyncadd [#allocation6], 4294963168 }
  0x16   :  { %1060 = dma.done.wait [#allocation9], 3072  }
  0x17   :  { %1061 = vsyncadd [#allocation9], 4294964224  ;;  %v678_v0 = vld [vmem:[#allocation5 + $0x70] sm:$0xf]  ;;  %v859_v1 = vld [vmem:[#allocation5 + $0x74] sm:$0xf0] }
  0x18   :  { %v742_v2 = vld [vmem:[#allocation5 + $0xf0] sm:$0xf]  ;;  %v679_v3 = vor.u32 %v859_v1, %v678_v0  ;;  %v875_v4 = vld [vmem:[#allocation5 + $0xf4] sm:$0xf0]  ;;  %v858_v5 = vld [vmem:[#allocation5 + $0x74] sm:$0xf] }
  0x19   :  { %v680_v6 = vld [vmem:[#allocation5 + $0x78] sm:$0xf0]  ;;  %v743_v7 = vor.u32 %v875_v4, %v742_v2  ;;  %v874_v9 = vld [vmem:[#allocation5 + $0xf4] sm:$0xf]  ;;  %v670_v11 = vld [vmem:[#allocation5 + $0x60] sm:$0xf] }
  0x1a   :  { %v683_v8 = vor.u32 %v858_v5, %v680_v6  ;;  %v744_v10 = vld [vmem:[#allocation5 + $0xf8] sm:$0xf0]  ;;  %303 = vmatpush.bf16.msra.mxu0 %v679_v3  ;;  %v857_v13 = vld [vmem:[#allocation5 + $0x64] sm:$0xf0]  ;;  %v734_v14 = vld [vmem:[#allocation5 + $0xe0] sm:$0xf] }
  0x1b   :  { %v747_v12 = vor.u32 %v874_v9, %v744_v10  ;;  %v873_v15 = vld [vmem:[#allocation5 + $0xe4] sm:$0xf0]  ;;  %316 = vmatpush.bf16.msra.mxu1 %v743_v7  ;;  %v671_v16 = vor.u32 %v857_v13, %v670_v11  ;;  %v856_v18 = vld [vmem:[#allocation5 + $0x64] sm:$0xf]  ;;  %v672_v19 = vld [vmem:[#allocation5 + $0x68] sm:$0xf0] }
  0x1c   :  { %329 = vmatpush.bf16.msra.mxu2 %v683_v8  ;;  %v735_v17 = vor.u32 %v873_v15, %v734_v14  ;;  %v872_v20 = vld [vmem:[#allocation5 + $0xe4] sm:$0xf]  ;;  %v675_v21 = vor.u32 %v856_v18, %v672_v19  ;;  %v736_v22 = vld [vmem:[#allocation5 + $0xe8] sm:$0xf0]  ;;  %v662_v23 = vld [vmem:[#allocation5 + $0x50] sm:$0xf] }
  0x1d   :  { %342 = vmatpush.bf16.msra.mxu3 %v747_v12  ;;  %v855_v24 = vld [vmem:[#allocation5 + $0x54] sm:$0xf0]  ;;  %v739_v25 = vor.u32 %v872_v20, %v736_v22  ;;  %v726_v26 = vld [vmem:[#allocation5 + $0xd0] sm:$0xf]  ;;  %v854_v28 = vld [vmem:[#allocation5 + $0x54] sm:$0xf] }
  0x1e   :  { %v871_v27 = vld [vmem:[#allocation5 + $0xd4] sm:$0xf0]  ;;  %304 = vmatpush.bf16.msra.mxu0 %v671_v16  ;;  %v663_v29 = vor.u32 %v855_v24, %v662_v23  ;;  %v664_v30 = vld [vmem:[#allocation5 + $0x58] sm:$0xf0]  ;;  %v870_v31 = vld [vmem:[#allocation5 + $0xd4] sm:$0xf] }
  0x1f   :  { %v728_v32 = vld [vmem:[#allocation5 + $0xd8] sm:$0xf0]  ;;  %317 = vmatpush.bf16.msra.mxu1 %v735_v17  ;;  %v727_v33 = vor.u32 %v871_v27, %v726_v26  ;;  %v667_v34 = vor.u32 %v854_v28, %v664_v30  ;;  %v654_v35 = vld [vmem:[#allocation5 + $0x40] sm:$0xf]  ;;  %v853_v36 = vld [vmem:[#allocation5 + $0x44] sm:$0xf0] }
  0x20   :  { %330 = vmatpush.bf16.msra.mxu2 %v675_v21  ;;  %v718_v37 = vld [vmem:[#allocation5 + $0xc0] sm:$0xf]  ;;  %v731_v38 = vor.u32 %v870_v31, %v728_v32  ;;  %v869_v39 = vld [vmem:[#allocation5 + $0xc4] sm:$0xf0]  ;;  %v852_v40 = vld [vmem:[#allocation5 + $0x44] sm:$0xf]  ;;  %v655_v44 = vor.u32 %v853_v36, %v654_v35 }
  0x21   :  { %343 = vmatpush.bf16.msra.mxu3 %v739_v25  ;;  %v656_v41 = vld [vmem:[#allocation5 + $0x48] sm:$0xf0]  ;;  %v868_v42 = vld [vmem:[#allocation5 + $0xc4] sm:$0xf]  ;;  %v719_v45 = vor.u32 %v869_v39, %v718_v37  ;;  %v646_v47 = vld [vmem:[#allocation5 + $0x30] sm:$0xf] }
  0x22   :  { %v720_v43 = vld [vmem:[#allocation5 + $0xc8] sm:$0xf0]  ;;  %305 = vmatpush.bf16.msra.mxu0 %v663_v29  ;;  %v659_v46 = vor.u32 %v852_v40, %v656_v41  ;;  %v851_v48 = vld [vmem:[#allocation5 + $0x34] sm:$0xf0]  ;;  %v710_v49 = vld [vmem:[#allocation5 + $0xb0] sm:$0xf] }
  0x23   :  { %318 = vmatpush.bf16.msra.mxu1 %v727_v33  ;;  %v723_v50 = vor.u32 %v868_v42, %v720_v43  ;;  %v867_v51 = vld [vmem:[#allocation5 + $0xb4] sm:$0xf0]  ;;  %v850_v52 = vld [vmem:[#allocation5 + $0x34] sm:$0xf]  ;;  %v648_v53 = vld [vmem:[#allocation5 + $0x38] sm:$0xf0]  ;;  %v647_v56 = vor.u32 %v851_v48, %v646_v47 }
  0x24   :  { %331 = vmatpush.bf16.msra.mxu2 %v667_v34  ;;  %v866_v54 = vld [vmem:[#allocation5 + $0xb4] sm:$0xf]  ;;  %v712_v55 = vld [vmem:[#allocation5 + $0xb8] sm:$0xf0]  ;;  %v711_v57 = vor.u32 %v867_v51, %v710_v49  ;;  %v651_v58 = vor.u32 %v850_v52, %v648_v53  ;;  %v638_v59 = vld [vmem:[#allocation5 + $0x20] sm:$0xf] }
  0x25   :  { %344 = vmatpush.bf16.msra.mxu3 %v731_v38  ;;  %v849_v60 = vld [vmem:[#allocation5 + $0x24] sm:$0xf0]  ;;  %v702_v61 = vld [vmem:[#allocation5 + $0xa0] sm:$0xf]  ;;  %v715_v62 = vor.u32 %v866_v54, %v712_v55  ;;  %v848_v0 = vld [vmem:[#allocation5 + $0x24] sm:$0xf] }
  0x26   :  { %306 = vmatpush.bf16.msra.mxu0 %v655_v44  ;;  %v865_v63 = vld [vmem:[#allocation5 + $0xa4] sm:$0xf0]  ;;  %v640_v1 = vld [vmem:[#allocation5 + $0x28] sm:$0xf0]  ;;  %v864_v2 = vld [vmem:[#allocation5 + $0xa4] sm:$0xf]  ;;  %v639_v4 = vor.u32 %v849_v60, %v638_v59 }
  0x27   :  { %319 = vmatpush.bf16.msra.mxu1 %v719_v45  ;;  %v704_v3 = vld [vmem:[#allocation5 + $0xa8] sm:$0xf0]  ;;  %v703_v5 = vor.u32 %v865_v63, %v702_v61  ;;  %v643_v6 = vor.u32 %v848_v0, %v640_v1  ;;  %v630_v7 = vld [vmem:[#allocation5 + $0x10] sm:$0xf]  ;;  %v847_v8 = vld [vmem:[#allocation5 + $0x14] sm:$0xf0] }
  0x28   :  { %332 = vmatpush.bf16.msra.mxu2 %v659_v46  ;;  %v694_v9 = vld [vmem:[#allocation5 + $0x90] sm:$0xf]  ;;  %v707_v10 = vor.u32 %v864_v2, %v704_v3  ;;  %v863_v11 = vld [vmem:[#allocation5 + $0x94] sm:$0xf0]  ;;  %v846_v12 = vld [vmem:[#allocation5 + $0x14] sm:$0xf]  ;;  %v631_v16 = vor.u32 %v847_v8, %v630_v7 }
  0x29   :  { %345 = vmatpush.bf16.msra.mxu3 %v723_v50  ;;  %v632_v13 = vld [vmem:[#allocation5 + $0x18] sm:$0xf0]  ;;  %v862_v14 = vld [vmem:[#allocation5 + $0x94] sm:$0xf]  ;;  %v622_v17 = vld [vmem:[#allocation5] sm:$0xf]  ;;  %v695_v18 = vor.u32 %v863_v11, %v694_v9 }
  0x2a   :  { %307 = vmatpush.bf16.msra.mxu0 %v647_v56  ;;  %v696_v15 = vld [vmem:[#allocation5 + $0x98] sm:$0xf0]  ;;  %v635_v19 = vor.u32 %v846_v12, %v632_v13  ;;  %v845_v20 = vld [vmem:[#allocation5 + $0x4] sm:$0xf0]  ;;  %v686_v21 = vld [vmem:[#allocation5 + $0x80] sm:$0xf] }
  0x2b   :  { %320 = vmatpush.bf16.msra.mxu1 %v711_v57  ;;  %v861_v22 = vld [vmem:[#allocation5 + $0x84] sm:$0xf0]  ;;  %v699_v23 = vor.u32 %v862_v14, %v696_v15  ;;  %v844_v24 = vld [vmem:[#allocation5 + $0x4] sm:$0xf]  ;;  %v624_v25 = vld [vmem:[#allocation5 + $0x8] sm:$0xf0]  ;;  %v623_v28 = vor.u32 %v845_v20, %v622_v17 }
  0x2c   :  { %333 = vmatpush.bf16.msra.mxu2 %v651_v58  ;;  %v860_v26 = vld [vmem:[#allocation5 + $0x84] sm:$0xf]  ;;  %v688_v27 = vld [vmem:[#allocation5 + $0x88] sm:$0xf0]  ;;  %v101_v29 = vld [vmem:[#allocation2] sm:$0xff]  ;;  %v687_v30 = vor.u32 %v861_v22, %v686_v21  ;;  %v627_v31 = vor.u32 %v844_v24, %v624_v25  ;;  %s1073_s29 = smov [#allocation11]  }
  0x2d   :  { %346 = vmatpush.bf16.msra.mxu3 %v715_v62  ;;  %v102_v32 = vld [vmem:[#allocation2 + $0x8] sm:$0xff]  ;;  %v691_v33 = vor.u32 %v860_v26, %v688_v27  ;;  %v103_v35 = vpack.c.bf16 %v101_v29, %v101_v29  ;;  %v881_v40 = vld [vmem:[#allocation8 + $0x28] sm:$0xff]  ;;  %v880_v42 = vld [vmem:[#allocation8 + $0x20] sm:$0xff]  ;;  %s606_s30 = sshll.u32 %s1073_s29, 4  ;;  %s608_s10 = sshll.u32 %s1145_s7, 4  ;;  %s607_s30 = int_to_ptr.vmem [resolvable:$true] %s606_s30  ;;  %s609_s10 = int_to_ptr.hbm [resolvable:$true] %s608_s10 }
  0x2e   :  { %308 = vmatpush.bf16.msra.mxu0 %v639_v4  ;;  %v883_v34 = vld [vmem:[#allocation8 + $0x38] sm:$0xff]  ;;  %v104_v37 = vpack.c.bf16 %v102_v32, %v102_v32  ;;  %v882_v38 = vld [vmem:[#allocation8 + $0x30] sm:$0xff]  ;;  %v889_v41 = vld [vmem:[#allocation8 + $0x68] sm:$0xff] }
  0x2f   :  { %321 = vmatpush.bf16.msra.mxu1 %v703_v5  ;;  %v891_v36 = vld [vmem:[#allocation8 + $0x78] sm:$0xff]  ;;  %v890_v39 = vld [vmem:[#allocation8 + $0x70] sm:$0xff]  ;;  %v888_v43 = vld [vmem:[#allocation8 + $0x60] sm:$0xff] }
  0x30   :  { %334 = vmatpush.bf16.msra.mxu2 %v643_v6  ;;  %v879_v44 = vld [vmem:[#allocation8 + $0x18] sm:$0xff]  ;;  %v878_v45 = vld [vmem:[#allocation8 + $0x10] sm:$0xff]  ;;  %v877_v47 = vld [vmem:[#allocation8 + $0x8] sm:$0xff] }
  0x31   :  { %347 = vmatpush.bf16.msra.mxu3 %v707_v10  ;;  %v887_v46 = vld [vmem:[#allocation8 + $0x58] sm:$0xff]  ;;  %v886_v48 = vld [vmem:[#allocation8 + $0x50] sm:$0xff]  ;;  %v876_v49 = vld [vmem:[#allocation8] sm:$0xff] }
  0x32   :  { %309 = vmatpush.bf16.msra.mxu0 %v631_v16  ;;  %v885_v50 = vld [vmem:[#allocation8 + $0x48] sm:$0xff]  ;;  %v884_v51 = vld [vmem:[#allocation8 + $0x40] sm:$0xff]  ;;  %v899_v52 = vld [vmem:[#allocation10 + $0x38] sm:$0xff] }
  0x33   :  { %322 = vmatpush.bf16.msra.mxu1 %v695_v18  ;;  %v898_v53 = vld [vmem:[#allocation10 + $0x30] sm:$0xff]  ;;  %v897_v54 = vld [vmem:[#allocation10 + $0x28] sm:$0xff]  ;;  %v137_v55 = vld [vmem:[#allocation7] sm:$0x3] }
  0x34   :  { %335 = vmatpush.bf16.msra.mxu2 %v635_v19  ;;  %v896_v56 = vld [vmem:[#allocation10 + $0x20] sm:$0xff]  ;;  %v139_v57 = vperm.slane %v137_v55, 0  ;;  %v895_v58 = vld [vmem:[#allocation10 + $0x18] sm:$0xff]  ;;  %v140_v63 = vperm.slane %v137_v55, 1  ;;  %v894_v12 = vld [vmem:[#allocation10 + $0x10] sm:$0xff] }
  0x35   :  { %348 = vmatpush.bf16.msra.mxu3 %v699_v23  ;;  %v893_v13 = vld [vmem:[#allocation10 + $0x8] sm:$0xff]  ;;  %v892_v14 = vld [vmem:[#allocation10] sm:$0xff] }
  0x36   :  { %310 = vmatpush.bf16.msra.mxu0 %v623_v28  ;;  %v910_v15 = vld [vmem:[%s1142_s4] ss:$0 sm:$0xff] }
  0x37   :  { %323 = vmatpush.bf16.msra.mxu1 %v687_v30  ;;  %v911_v24 = vld [vmem:[%s1144_s6] ss:$0 sm:$0xff] }
  0x38   :  { %336 = vmatpush.bf16.msra.mxu2 %v627_v31 }
  0x39   :  { %349 = vmatpush.bf16.msra.mxu3 %v691_v33  ;;  %311 = vmatmul.bf16.vlgmr.msra.gmra.mxu0 %v103_v35 }
  0x3a   :  { %491 = vmatpush.bf16.msrb.mxu0 %v883_v34  ;;  %324 = vmatmul.bf16.vlgmr.msra.gmra.mxu1 %v104_v37 }
  0x3b   :  { %504 = vmatpush.bf16.msrb.mxu1 %v891_v36  ;;  %337 = vmatmul.bf16.vlgmr.msra.gmra.mxu2 %v103_v35 }
  0x3c   :  { %350 = vmatmul.bf16.vlgmr.msra.gmra.mxu3 %v104_v37  ;;  %587 = vmatpush.bf16.msrb.mxu2 %v899_v52 }
  0x3e   :  { %492 = vmatpush.bf16.msrb.mxu0 %v882_v38 }
  0x3f   :  { %505 = vmatpush.bf16.msrb.mxu1 %v890_v39 }
  0x40   :  { %588 = vmatpush.bf16.msrb.mxu2 %v898_v53 }
  0x42   :  { %493 = vmatpush.bf16.msrb.mxu0 %v881_v40 }
  0x43   :  { %506 = vmatpush.bf16.msrb.mxu1 %v889_v41 }
  0x44   :  { %589 = vmatpush.bf16.msrb.mxu2 %v897_v54 }
  0x46   :  { %494 = vmatpush.bf16.msrb.mxu0 %v880_v42 }
  0x47   :  { %507 = vmatpush.bf16.msrb.mxu1 %v888_v43 }
  0x48   :  { %590 = vmatpush.bf16.msrb.mxu2 %v896_v56 }
  0x4a   :  { %495 = vmatpush.bf16.msrb.mxu0 %v879_v44 }
  0x4b   :  { %508 = vmatpush.bf16.msrb.mxu1 %v887_v46 }
  0x4c   :  { %591 = vmatpush.bf16.msrb.mxu2 %v895_v58 }
  0x4e   :  { %496 = vmatpush.bf16.msrb.mxu0 %v878_v45 }
  0x4f   :  { %509 = vmatpush.bf16.msrb.mxu1 %v886_v48 }
  0x50   :  { %592 = vmatpush.bf16.msrb.mxu2 %v894_v12 }
  0x52   :  { %497 = vmatpush.bf16.msrb.mxu0 %v877_v47 }
  0x53   :  { %510 = vmatpush.bf16.msrb.mxu1 %v885_v50 }
  0x54   :  { %593 = vmatpush.bf16.msrb.mxu2 %v893_v13 }
  0x56   :  { %498 = vmatpush.bf16.msrb.mxu0 %v876_v49 }
  0x57   :  { %511 = vmatpush.bf16.msrb.mxu1 %v884_v51 }
  0x58   :  { %594 = vmatpush.bf16.msrb.mxu2 %v892_v14 }
  0xb6   :  { %v312_v59 = vpop.f32.mrf.mxu0 }
  0xb7   :  { %v313_v60 = vadd.f32 %v312_v59, %v139_v57  ;;  %v325_v61 = vpop.f32.mrf.mxu1 }
  0xb9   :  { %v326_v62 = vadd.f32 %v325_v61, %v313_v60 }
  0xbb   :  { %v355_v0 = vmax.f32 %v326_v62, 0.0 }
  0xbd   :  { %v357_v1 = vpack.c.bf16 %v355_v0, %v355_v0 }
  0xbe   :  { %v338_v2 = vpop.f32.mrf.mxu2  ;;  %v314_v5 = vpop.f32.mrf.mxu0 }
  0xbf   :  { %v339_v3 = vadd.f32 %v338_v2, %v140_v63  ;;  %v351_v4 = vpop.f32.mrf.mxu3  ;;  %v327_v6 = vpop.f32.mrf.mxu1  ;;  %499 = vmatmul.bf16.vlgmr.msrb.gmra.mxu0 %v357_v1 }
  0xc1   :  { %v352_v7 = vadd.f32 %v351_v4, %v339_v3 }
  0xc3   :  { %v356_v8 = vmax.f32 %v352_v7, 0.0 }
  0xc5   :  { %v358_v9 = vpack.c.bf16 %v356_v8, %v356_v8 }
  0xc6   :  { %v340_v10 = vpop.f32.mrf.mxu2 }
  0xc7   :  { %v353_v11 = vpop.f32.mrf.mxu3  ;;  %512 = vmatmul.bf16.vlgmr.msrb.gmra.mxu1 %v358_v9 }
 0x13c   :  { %v500_v16 = vpop.f32.mrf.mxu0 }
 0x13d   :  { %v501_v17 = vadd.f32 %v910_v15, %v500_v16 }
 0x144   :  { %v513_v18 = vpop.f32.mrf.mxu1  ;;  %v502_v20 = vpop.f32.mrf.mxu0 }
 0x145   :  { %v514_v19 = vadd.f32 %v513_v18, %v501_v17 }
 0x147   :  { %v517_v21 = vmax.f32 %v514_v19, 0.0 }
 0x149   :  { %v518_v22 = vpack.c.bf16 %v517_v21, %v517_v21 }
 0x14b   :  { %595 = vmatmul.bf16.vlgmr.msrb.gmra.mxu2 %v518_v22 }
 0x14c   :  { %v515_v23 = vpop.f32.mrf.mxu1 }
 0x1ce   :  { %v596_v25 = vpop.f32.mrf.mxu2 }
 0x1cf   :  { %v597_v26 = vadd.f32 %v911_v24, %v596_v25 }
 0x1d1   :  { %600 = vst [vmem:[#allocation11] sm:$0xff] %v597_v26 }
 0x1d2   :  { %611 = dma.vmem_to_hbm [thread:$0]  %s607_s30, 128, %s609_s10, [#allocation4]  }
 0x1d6   :  { %v598_v27 = vpop.f32.mrf.mxu2 }
 0x1d7   :  { %1062 = dma.done.wait [#allocation4], 128  }
 0x1d8   :  { %1063 = vsyncadd [#allocation4], 4294967168 }
 0x1d9   :  { %616 = vsyncpa [#allocation3], 1 }
 0x1da   :  { %617 = vsyncpa [#allocation6], 1 }
 0x1db   :  { %618 = vsyncpa [#allocation9], 1 }
 0x1dc   :  { %619 = vsyncpa [#allocation4], 1 }

</bundles_post_ra>
